<compile_context>
chip_gen: v5e
topology: v5e:2x2
jax: 0.10.0
libtpu: 0.0.40
codegen_flags: <defaults>
</compile_context>

<pallas_src>
import jax
import jax.numpy as jnp
from jax.experimental import pallas as pl
from jax.experimental.pallas import tpu as pltpu

D_IN, D_H, D_OUT = 32, 64, 16


def conditional_net_kernel(stats_ref, x_ref, w1_ref, b1_ref, w2_ref, b2_ref,
                           w3_ref, o_ref):
    # Global normalization constants precomputed in the wrapper (SMEM scalars).
    mean = stats_ref[0]
    inv_std = stats_ref[1]

    # (x - mean) * inv_std, cast to bf16 for MXU-native matmul inputs.
    h = ((x_ref[...] - mean) * inv_std).astype(jnp.bfloat16)

    # Linear(32 -> 64, bias) + ReLU
    h = jnp.dot(h, w1_ref[...], preferred_element_type=jnp.float32) + b1_ref[...]
    h = jnp.maximum(h, 0.0).astype(jnp.bfloat16)

    # Linear(64 -> 64, bias) + ReLU
    h = jnp.dot(h, w2_ref[...], preferred_element_type=jnp.float32) + b2_ref[...]
    h = jnp.maximum(h, 0.0).astype(jnp.bfloat16)

    # Linear(64 -> 16, no bias).  f32 store; block last dim == full array dim.
    o_ref[...] = jnp.dot(h, w3_ref[...], preferred_element_type=jnp.float32)


def conditional_net(x, w1, b1, w2, b2, w3, *, tm=2048):
    """x: [N, 32] f32. Weights pre-transposed to (in, out); biases shape (out,).

    tm: batch-tile rows (multiple of 8).  Default 2048 keeps the mem-bound
    pipeline near the HBM roofline; for v7x pick tm so the grid has >= 2
    (ideally an even number of) steps so both TensorCores are used.
    """
    N = x.shape[0]
    x = x.astype(jnp.float32)

    # Global (whole-tensor) mean / unbiased std, matching torch.std() (ddof=1).
    # Single fused pass over x: both reductions come from one HBM read.
    size = x.size
    s1 = jnp.sum(x)
    s2 = jnp.sum(x * x)
    mean = s1 / size
    var = (s2 - size * mean * mean) / (size - 1)
    inv_std = jax.lax.rsqrt(var)
    stats = jnp.stack([mean, inv_std]).astype(jnp.float32)  # (2,) -> SMEM

    # MXU-native bf16 weights; keep f32 biases (added to the f32 accumulator).
    w1b = w1.astype(jnp.bfloat16)
    w2b = w2.astype(jnp.bfloat16)
    w3b = w3.astype(jnp.bfloat16)
    b1r = b1.reshape(1, D_H).astype(jnp.float32)
    b2r = b2.reshape(1, D_H).astype(jnp.float32)

    grid = (pl.cdiv(N, tm),)

    def resident(shape):
        # Same block index every grid step -> DMA'd once, stays in VMEM.
        return pl.BlockSpec(shape, lambda i: (0, 0))

    out = pl.pallas_call(
        conditional_net_kernel,
        out_shape=jax.ShapeDtypeStruct((N, D_OUT), jnp.float32),
        grid=grid,
        in_specs=[
            pl.BlockSpec(memory_space=pltpu.MemorySpace.SMEM),  # stats (scalars)
            pl.BlockSpec((tm, D_IN), lambda i: (i, 0)),         # x tile
            resident((D_IN, D_H)),                              # w1
            resident((1, D_H)),                                 # b1
            resident((D_H, D_H)),                               # w2
            resident((1, D_H)),                                 # b2
            resident((D_H, D_OUT)),                             # w3
        ],
        out_specs=pl.BlockSpec((tm, D_OUT), lambda i: (i, 0)),
        compiler_params=pltpu.CompilerParams(
            dimension_semantics=("parallel",)),
    )(stats, x, w1b, b1r, w2b, b2r, w3b)

    return out


def _reference(x, w1, b1, w2, b2, w3):
    # f32 reference using the same bf16-rounded weights the kernel consumes.
    x = x.astype(jnp.float32)
    bf = lambda w: w.astype(jnp.bfloat16).astype(jnp.float32)
    mean = jnp.mean(x)
    std = jnp.sqrt(jnp.sum((x - mean) ** 2) / (x.size - 1))  # torch.std (ddof=1)
    h = (x - mean) / std
    h = jnp.maximum(h @ bf(w1) + b1, 0.0)
    h = jnp.maximum(h @ bf(w2) + b2, 0.0)
    return h @ bf(w3)


if __name__ == "__main__":
    key = jax.random.PRNGKey(0)
    k_x, k1, k2, k3 = jax.random.split(key, 4)

    # Small demo shape; tm=256 -> grid of 2 batch tiles (one per v7x TC).
    N, TM = 512, 256

    x = jax.random.normal(k_x, (N, D_IN), dtype=jnp.float32) * 3.0 + 1.5

    # Deterministic weight init (Kaiming-uniform-ish scale), stored as (in, out).
    def init_w(k, d_in, d_out):
        bound = 1.0 / jnp.sqrt(d_in)
        return jax.random.uniform(k, (d_in, d_out), jnp.float32, -bound, bound)

    w1 = init_w(k1, D_IN, D_H)
    b1 = jnp.zeros((D_H,), jnp.float32)   # nn.init.zeros_ on biases
    w2 = init_w(k2, D_H, D_H)
    b2 = jnp.zeros((D_H,), jnp.float32)
    w3 = init_w(k3, D_H, D_OUT)           # last layer: bias=False

    out = jax.block_until_ready(conditional_net(x, w1, b1, w2, b2, w3, tm=TM))
    ref = _reference(x, w1, b1, w2, b2, w3)

    assert out.shape == (N, D_OUT), out.shape
    max_err = float(jnp.max(jnp.abs(out - ref)))
    # bf16 matmul inputs (f32 accumulation) -> tolerance a bit looser than f32.
    assert jnp.allclose(out, ref, atol=5e-2, rtol=5e-2), max_err
    print("KERNEL_OK")
</pallas_src>

<mosaic_0001>
module attributes {stable_mosaic.version = 11 : i64} {
  func.func @conditional_net_kernel(%arg0: i32, %arg1: memref<2xf32, #tpu.memory_space<smem>>, %arg2: memref<256x32xf32, #tpu.memory_space<vmem>>, %arg3: memref<32x64xbf16, #tpu.memory_space<vmem>>, %arg4: memref<1x64xf32, #tpu.memory_space<vmem>>, %arg5: memref<64x64xbf16, #tpu.memory_space<vmem>>, %arg6: memref<1x64xf32, #tpu.memory_space<vmem>>, %arg7: memref<64x16xbf16, #tpu.memory_space<vmem>>, %arg8: memref<256x16xf32, #tpu.memory_space<vmem>>) attributes {dimension_semantics = [#tpu.dimension_semantics<parallel>], iteration_bounds = array<i64: 2>, scalar_prefetch = 0 : i64, scratch_operands = 0 : i64, tpu.core_type = #tpu.core_type<tc>, window_params = [{transform_indices = @transform_0, window_bounds = array<i64: 2>}, {transform_indices = @transform_1, window_bounds = array<i64: 256, 32>}, {pipeline_mode = #tpu.pipeline_mode<synchronous>, transform_indices = @transform_2, window_bounds = array<i64: 32, 64>}, {pipeline_mode = #tpu.pipeline_mode<synchronous>, transform_indices = @transform_3, window_bounds = array<i64: 1, 64>}, {pipeline_mode = #tpu.pipeline_mode<synchronous>, transform_indices = @transform_4, window_bounds = array<i64: 64, 64>}, {pipeline_mode = #tpu.pipeline_mode<synchronous>, transform_indices = @transform_5, window_bounds = array<i64: 1, 64>}, {pipeline_mode = #tpu.pipeline_mode<synchronous>, transform_indices = @transform_6, window_bounds = array<i64: 64, 16>}, {transform_indices = @transform_7, window_bounds = array<i64: 256, 16>}]} {
    %c0 = arith.constant 0 : index
    %0 = memref.load %arg1[%c0] : memref<2xf32, #tpu.memory_space<smem>>
    %c1 = arith.constant 1 : index
    %1 = memref.load %arg1[%c1] : memref<2xf32, #tpu.memory_space<smem>>
    %c0_0 = arith.constant 0 : index
    %c0_1 = arith.constant 0 : index
    %2 = vector.load %arg2[%c0_0, %c0_1] : memref<256x32xf32, #tpu.memory_space<vmem>>, vector<256x32xf32>
    %3 = vector.broadcast %0 : f32 to vector<256x32xf32>
    %4 = arith.subf %2, %3 : vector<256x32xf32>
    %5 = vector.broadcast %1 : f32 to vector<256x32xf32>
    %6 = arith.mulf %4, %5 : vector<256x32xf32>
    %7 = arith.truncf %6 : vector<256x32xf32> to vector<256x32xbf16>
    %c0_2 = arith.constant 0 : index
    %c0_3 = arith.constant 0 : index
    %8 = vector.load %arg3[%c0_2, %c0_3] : memref<32x64xbf16, #tpu.memory_space<vmem>>, vector<32x64xbf16>
    %cst = arith.constant dense<0.000000e+00> : vector<256x64xf32>
    %9 = tpu.matmul %7, %8, %cst {dimension_numbers = #tpu.dot_dimension_numbers<[1], [0], [0], [1], [0, 0, 1, 1], [], []>} : vector<256x32xbf16>, vector<32x64xbf16>, vector<256x64xf32> -> vector<256x64xf32>
    %c0_4 = arith.constant 0 : index
    %c0_5 = arith.constant 0 : index
    %10 = vector.load %arg4[%c0_4, %c0_5] : memref<1x64xf32, #tpu.memory_space<vmem>>, vector<1x64xf32>
    %11 = vector.broadcast %10 : vector<1x64xf32> to vector<256x64xf32>
    %12 = arith.addf %9, %11 : vector<256x64xf32>
    %cst_6 = arith.constant 0.000000e+00 : f32
    %13 = vector.broadcast %cst_6 : f32 to vector<256x64xf32>
    %14 = arith.maximumf %12, %13 : vector<256x64xf32>
    %15 = arith.truncf %14 : vector<256x64xf32> to vector<256x64xbf16>
    %c0_7 = arith.constant 0 : index
    %c0_8 = arith.constant 0 : index
    %16 = vector.load %arg5[%c0_7, %c0_8] : memref<64x64xbf16, #tpu.memory_space<vmem>>, vector<64x64xbf16>
    %cst_9 = arith.constant dense<0.000000e+00> : vector<256x64xf32>
    %17 = tpu.matmul %15, %16, %cst_9 {dimension_numbers = #tpu.dot_dimension_numbers<[1], [0], [0], [1], [0, 0, 1, 1], [], []>} : vector<256x64xbf16>, vector<64x64xbf16>, vector<256x64xf32> -> vector<256x64xf32>
    %c0_10 = arith.constant 0 : index
    %c0_11 = arith.constant 0 : index
    %18 = vector.load %arg6[%c0_10, %c0_11] : memref<1x64xf32, #tpu.memory_space<vmem>>, vector<1x64xf32>
    %19 = vector.broadcast %18 : vector<1x64xf32> to vector<256x64xf32>
    %20 = arith.addf %17, %19 : vector<256x64xf32>
    %cst_12 = arith.constant 0.000000e+00 : f32
    %21 = vector.broadcast %cst_12 : f32 to vector<256x64xf32>
    %22 = arith.maximumf %20, %21 : vector<256x64xf32>
    %23 = arith.truncf %22 : vector<256x64xf32> to vector<256x64xbf16>
    %c0_13 = arith.constant 0 : index
    %c0_14 = arith.constant 0 : index
    %24 = vector.load %arg7[%c0_13, %c0_14] : memref<64x16xbf16, #tpu.memory_space<vmem>>, vector<64x16xbf16>
    %cst_15 = arith.constant dense<0.000000e+00> : vector<256x16xf32>
    %25 = tpu.matmul %23, %24, %cst_15 {dimension_numbers = #tpu.dot_dimension_numbers<[1], [0], [0], [1], [0, 0, 1, 1], [], []>} : vector<256x64xbf16>, vector<64x16xbf16>, vector<256x16xf32> -> vector<256x16xf32>
    %c0_16 = arith.constant 0 : index
    %c0_17 = arith.constant 0 : index
    %26 = vector.load %arg8[%c0_16, %c0_17] : memref<256x16xf32, #tpu.memory_space<vmem>>, vector<256x16xf32>
    tpu.vector_store %arg8[%c0_16, %c0_17], %25 {strides = array<i32>} : memref<256x16xf32, #tpu.memory_space<vmem>>, vector<256x16xf32>,
    return
  }
  func.func @transform_0(%arg0: i32) -> i32 {
    %c0_i32 = arith.constant 0 : i32
    %c0_i32_0 = arith.constant 0 : i32
    return %c0_i32 : i32
  }
  func.func @transform_1(%arg0: i32) -> (i32, i32) {
    %c0_i32 = arith.constant 0 : i32
    %c0_i32_0 = arith.constant 0 : i32
    return %arg0, %c0_i32 : i32, i32
  }
  func.func @transform_2(%arg0: i32) -> (i32, i32) {
    %c0_i32 = arith.constant 0 : i32
    %c0_i32_0 = arith.constant 0 : i32
    %c0_i32_1 = arith.constant 0 : i32
    return %c0_i32, %c0_i32_0 : i32, i32
  }
  func.func @transform_3(%arg0: i32) -> (i32, i32) {
    %c0_i32 = arith.constant 0 : i32
    %c0_i32_0 = arith.constant 0 : i32
    %c0_i32_1 = arith.constant 0 : i32
    return %c0_i32, %c0_i32_0 : i32, i32
  }
  func.func @transform_4(%arg0: i32) -> (i32, i32) {
    %c0_i32 = arith.constant 0 : i32
    %c0_i32_0 = arith.constant 0 : i32
    %c0_i32_1 = arith.constant 0 : i32
    return %c0_i32, %c0_i32_0 : i32, i32
  }
  func.func @transform_5(%arg0: i32) -> (i32, i32) {
    %c0_i32 = arith.constant 0 : i32
    %c0_i32_0 = arith.constant 0 : i32
    %c0_i32_1 = arith.constant 0 : i32
    return %c0_i32, %c0_i32_0 : i32, i32
  }
  func.func @transform_6(%arg0: i32) -> (i32, i32) {
    %c0_i32 = arith.constant 0 : i32
    %c0_i32_0 = arith.constant 0 : i32
    %c0_i32_1 = arith.constant 0 : i32
    return %c0_i32, %c0_i32_0 : i32, i32
  }
  func.func @transform_7(%arg0: i32) -> (i32, i32) {
    %c0_i32 = arith.constant 0 : i32
    %c0_i32_0 = arith.constant 0 : i32
    return %arg0, %c0_i32 : i32, i32
  }
}

</mosaic_0001>

<bundles_post_ra>
// kernel: tpu_custom_call.1
= control target key start
LH: loop header
LB: loop body
LE: loop exit
PB: predicated region body
PF: predicated region fallthrough
CT: control target
= control target key end

     0   :  { %12 = vsyncpa [#allocation3], 0  ;;  %s1322_s24 = smov 0   ;;  %s1669_s0 = inlined_call_operand.vmem [shape: f32[2], index: 0, kind: input, shape index: {}]   ;;  %s1670_s1 = inlined_call_operand.vmem [shape: f32[512,32], index: 1, kind: input, shape index: {}]   ;;  %s1671_s2 = inlined_call_operand.vmem [shape: bf16[32,64], index: 2, kind: input, shape index: {}]   ;;  %s1672_s3 = inlined_call_operand.vmem [shape: f32[1,64], index: 3, kind: input, shape index: {}]   ;;  %s1673_s4 = inlined_call_operand.vmem [shape: bf16[64,64], index: 4, kind: input, shape index: {}]   ;;  %s1674_s5 = inlined_call_operand.vmem [shape: f32[1,64], index: 5, kind: input, shape index: {}]   ;;  %s1675_s6 = inlined_call_operand.vmem [shape: bf16[64,16], index: 6, kind: input, shape index: {}]   ;;  %s1676_s7 = inlined_call_operand.vmem [shape: f32[512,16], index: 7, kind: output, shape index: {}]  }
   0x1 LB: > { %s1111_s25 = sadd.s32 4294967295, %s1279_s24   ;;  %p1113_p0 = scmp.ge.s32.totalorder %s1279_s24, 1  ;;  %s1279_s24 = sphi %s1322_s24, %s18_s24  }
   0x2   : > { %p201_p1 = scmp.lt.s32.totalorder %s1279_s24, 3  ;;  %s213_s28 = sshll.u32 %s1669_s0, 4  ;;  %s214_s28 = int_to_ptr.vmem [resolvable:$true] %s213_s28 }
   0x3   : > { %p1241_p3 = scmp.eq.s32.totalorder %s1111_s25, 0  ;;  %s1281_s29 = smov [#allocation2]  }
   0x4   : > { %p202_p2 = pnand %p1113_p0, %p201_p1 }
   0x6   : > { %p1237_p4 = pneg %p202_p2  ;;  %250 = sbr.rel (%p202_p2) target bundleno = 694 (0x2b6), region = 48 }
   0x8   : > { %p1238_p5 = pnand %p1241_p3, %p1237_p4 }
   0xa   : > { %1240 = dma.vmem_to_smem (!%p1238_p5), %s214_s28, 16, %s1281_s29, [#allocation3]  }
   0xb   : > { %1274 = dma.done.wait (%p1241_p3), [#allocation3], 16  }
   0xc   : > { %1276 = vsyncadd (%p1241_p3), [#allocation3], 4294967280 }
   0xd   : > { %257 = sfence }
   0xe   : > { %v1214_v0 = vld [vmem:[%s1671_s2 + $0x8] sm:$0xff]  ;;  %s1118_s9 = sshll.u32 %s1111_s25, 5  ;;  %s297_s10 = sld [smem:[#allocation2]]  ;;  %v1213_v1 = vld [vmem:[%s1671_s2] sm:$0xff]  ;;  %vm433_vm0 = vcmask 261120   ;;  %v1218_v52 = vld [vmem:[%s1673_s4 + $0x18] sm:$0xff] }
   0xf   : > { %p285_p6 = scmp.lt.s32.totalorder %s1118_s9, 63  ;;  %s1122_s11 = sld [smem:[#allocation2 + $0x1]]  ;;  %488 = vmatpush.bf16.msra.mxu0 %v1214_v0  ;;  %1223 = vmatpush.bf16.msra.mxu3 %v1214_v0  ;;  %v1217_v54 = vld [vmem:[%s1673_s4 + $0x10] sm:$0xff]  ;;  %v1216_v57 = vld [vmem:[%s1673_s4 + $0x8] sm:$0xff]  ;;  %v1215_v60 = vld [vmem:[%s1673_s4] sm:$0xff]  ;;  %vm655_vm1 = vcmask 523264  }
  0x10   : > { %708 = vmatpush.bf16.msra.mxu1 %v1218_v52  ;;  %vm1010_vm2 = vcmask 130048  }
  0x11   : > { %s1678_s9 = smov (!%p285_p6, %s1118_s9), 63 }
  0x12   : > { %s1119_s14 = sshll.u32 %s1678_s9, 3 }
  0x13   : > { %489 = vmatpush.bf16.msra.mxu0 %v1213_v1  ;;  %s1347_s17 = scalar_lea.vmem %s1670_s1, %s1119_s14  ;;  %1224 = vmatpush.bf16.msra.mxu3 %v1213_v1  ;;  %s1579_s20 = scalar_lea.vmem %s1676_s7, %s1119_s14 }
  0x14   : > { %v1349_v2 = vstv %s297_s10  ;;  %v299_v3 = vld [vmem:[%s1347_s17] sm:$0xff]  ;;  %v300_v4 = vld [vmem:[%s1347_s17 + $0x8] sm:$0xff]  ;;  %v301_v11 = vld [vmem:[%s1347_s17 + $0x10] sm:$0xff]  ;;  %709 = vmatpush.bf16.msra.mxu1 %v1217_v54 }
  0x15   : > { %v1353_v5 = vstv %s1122_s11  ;;  %v332_v6 = vsub.f32 %v299_v3, %v1349_v2  ;;  %v333_v7 = vsub.f32 %v300_v4, %v1349_v2  ;;  %v302_v12 = vld [vmem:[%s1347_s17 + $0x18] sm:$0xff]  ;;  %v334_v13 = vsub.f32 %v301_v11, %v1349_v2  ;;  %v303_v18 = vld [vmem:[%s1347_s17 + $0x20] sm:$0xff]  ;;  %v304_v19 = vld [vmem:[%s1347_s17 + $0x28] sm:$0xff] }
  0x16   : > { %v335_v14 = vsub.f32 %v302_v12, %v1349_v2  ;;  %v336_v20 = vsub.f32 %v303_v18, %v1349_v2  ;;  %v337_v21 = vsub.f32 %v304_v19, %v1349_v2  ;;  %v305_v25 = vld [vmem:[%s1347_s17 + $0x30] sm:$0xff]  ;;  %v306_v26 = vld [vmem:[%s1347_s17 + $0x38] sm:$0xff]  ;;  %v307_v32 = vld [vmem:[%s1347_s17 + $0x40] sm:$0xff] }
  0x17   : > { %v365_v8 = vmul.f32 %v1353_v5, %v332_v6  ;;  %v366_v9 = vmul.f32 %v1353_v5, %v333_v7  ;;  %v367_v15 = vmul.f32 %v1353_v5, %v334_v13  ;;  %v338_v27 = vsub.f32 %v305_v25, %v1349_v2  ;;  %v308_v33 = vld [vmem:[%s1347_s17 + $0x48] sm:$0xff]  ;;  %v309_v39 = vld [vmem:[%s1347_s17 + $0x50] sm:$0xff]  ;;  %v310_v40 = vld [vmem:[%s1347_s17 + $0x58] sm:$0xff]  ;;  %1225 = vmatpush.bf16.msrb.mxu3 %v1218_v52 }
  0x18   : > { %v368_v16 = vmul.f32 %v1353_v5, %v335_v14  ;;  %v369_v22 = vmul.f32 %v1353_v5, %v336_v20  ;;  %v370_v23 = vmul.f32 %v1353_v5, %v337_v21  ;;  %v339_v28 = vsub.f32 %v306_v26, %v1349_v2  ;;  %v311_v46 = vld [vmem:[%s1347_s17 + $0x60] sm:$0xff]  ;;  %v312_v47 = vld [vmem:[%s1347_s17 + $0x68] sm:$0xff]  ;;  %v313_v55 = vld [vmem:[%s1347_s17 + $0x70] sm:$0xff]  ;;  %710 = vmatpush.bf16.msra.mxu1 %v1216_v57 }
  0x19   : > { %v397_v10 = vpack.c.bf16 %v366_v9, %v365_v8  ;;  %v371_v29 = vmul.f32 %v1353_v5, %v338_v27  ;;  %v340_v34 = vsub.f32 %v307_v32, %v1349_v2  ;;  %v341_v35 = vsub.f32 %v308_v33, %v1349_v2  ;;  %v314_v56 = vld [vmem:[%s1347_s17 + $0x78] sm:$0xff]  ;;  %v315_v0 = vld [vmem:[%s1347_s17 + $0x80] sm:$0xff]  ;;  %v316_v1 = vld [vmem:[%s1347_s17 + $0x88] sm:$0xff] }
  0x1a   : > { %v398_v17 = vpack.c.bf16 %v368_v16, %v367_v15  ;;  %v399_v24 = vpack.c.bf16 %v370_v23, %v369_v22  ;;  %v372_v30 = vmul.f32 %v1353_v5, %v339_v28  ;;  %v342_v41 = vsub.f32 %v309_v39, %v1349_v2  ;;  %v317_v11 = vld [vmem:[%s1347_s17 + $0x90] sm:$0xff]  ;;  %v318_v12 = vld [vmem:[%s1347_s17 + $0x98] sm:$0xff]  ;;  %v319_v25 = vld [vmem:[%s1347_s17 + $0xa0] sm:$0xff] }
  0x1b   : > { %1131 = vmatmul.msk.bf16.vlgmr.msra.gmra.mxu0 %vm433_vm0, %v397_v10  ;;  %v373_v36 = vmul.f32 %v1353_v5, %v340_v34  ;;  %v374_v37 = vmul.f32 %v1353_v5, %v341_v35  ;;  %v343_v42 = vsub.f32 %v310_v40, %v1349_v2  ;;  %v344_v48 = vsub.f32 %v311_v46, %v1349_v2  ;;  %v1430_v10 = vld [vmem:[%s1672_s3] ss:$0 sm:$0xff]  ;;  %v320_v26 = vld [vmem:[%s1347_s17 + $0xa8] sm:$0xff]  ;;  %v321_v46 = vld [vmem:[%s1347_s17 + $0xb0] sm:$0xff] }
  0x1c   : > { %v400_v31 = vpack.c.bf16 %v372_v30, %v371_v29  ;;  %v375_v43 = vmul.f32 %v1353_v5, %v342_v41  ;;  %v345_v49 = vsub.f32 %v312_v47, %v1349_v2  ;;  %1226 = vmatpush.bf16.msrb.mxu3 %v1217_v54  ;;  %v346_v58 = vsub.f32 %v313_v55, %v1349_v2  ;;  %v322_v47 = vld [vmem:[%s1347_s17 + $0xb8] sm:$0xff] }
  0x1d   : > { %v401_v38 = vpack.c.bf16 %v374_v37, %v373_v36  ;;  %v376_v44 = vmul.f32 %v1353_v5, %v343_v42  ;;  %v377_v50 = vmul.f32 %v1353_v5, %v344_v48  ;;  %v347_v59 = vsub.f32 %v314_v56, %v1349_v2  ;;  %711 = vmatpush.bf16.msra.mxu1 %v1215_v60  ;;  %v325_v37 = vld [vmem:[%s1347_s17 + $0xd0] sm:$0xff] }
  0x1e   : > { %v378_v51 = vmul.f32 %v1353_v5, %v345_v49  ;;  %v379_v61 = vmul.f32 %v1353_v5, %v346_v58  ;;  %v348_v3 = vsub.f32 %v315_v0, %v1349_v2  ;;  %v349_v4 = vsub.f32 %v316_v1, %v1349_v2  ;;  %v327_v58 = vld [vmem:[%s1347_s17 + $0xe0] sm:$0xff] }
  0x1f   : > { %v402_v45 = vpack.c.bf16 %v376_v44, %v375_v43  ;;  %v380_v62 = vmul.f32 %v1353_v5, %v347_v59  ;;  %v350_v14 = vsub.f32 %v317_v11, %v1349_v2  ;;  %v351_v15 = vsub.f32 %v318_v12, %v1349_v2  ;;  %v328_v59 = vld [vmem:[%s1347_s17 + $0xe8] sm:$0xff] }
  0x20   : > { %v403_v53 = vpack.c.bf16 %v378_v51, %v377_v50  ;;  %1227 = vmatpush.bf16.msrb.mxu3 %v1216_v57  ;;  %v381_v6 = vmul.f32 %v1353_v5, %v348_v3  ;;  %v382_v7 = vmul.f32 %v1353_v5, %v349_v4  ;;  %v352_v28 = vsub.f32 %v319_v25, %v1349_v2  ;;  %v323_v4 = vld [vmem:[%s1347_s17 + $0xc0] sm:$0xff] }
  0x21   : > { %v404_v63 = vpack.c.bf16 %v380_v62, %v379_v61  ;;  %v383_v20 = vmul.f32 %v1353_v5, %v350_v14  ;;  %v384_v21 = vmul.f32 %v1353_v5, %v351_v15  ;;  %v353_v29 = vsub.f32 %v320_v26, %v1349_v2 }
  0x22   : > { %v405_v8 = vpack.c.bf16 %v382_v7, %v381_v6  ;;  %v385_v34 = vmul.f32 %v1353_v5, %v352_v28  ;;  %v358_v40 = vsub.f32 %v325_v37, %v1349_v2  ;;  %v354_v49 = vsub.f32 %v321_v46, %v1349_v2  ;;  %v324_v6 = vld [vmem:[%s1347_s17 + $0xc8] sm:$0xff]  ;;  %v1221_v46 = vld [vmem:[%s1675_s6 + $0x10] sm:$0xff] }
  0x23   : > { %v406_v23 = vpack.c.bf16 %v384_v21, %v383_v20  ;;  %v386_v35 = vmul.f32 %v1353_v5, %v353_v29  ;;  %v355_v50 = vsub.f32 %v322_v47, %v1349_v2  ;;  %v360_v61 = vsub.f32 %v327_v58, %v1349_v2 }
  0x24   : > { %1228 = vmatpush.bf16.msrb.mxu3 %v1215_v60  ;;  %v391_v43 = vmul.f32 %v1353_v5, %v358_v40  ;;  %v387_v55 = vmul.f32 %v1353_v5, %v354_v49  ;;  %v361_v62 = vsub.f32 %v328_v59, %v1349_v2  ;;  %v1219_v49 = vld [vmem:[%s1675_s6] sm:$0xff] }
  0x25   : > { %v407_v39 = vpack.c.bf16 %v386_v35, %v385_v34  ;;  %v388_v56 = vmul.f32 %v1353_v5, %v355_v50  ;;  %v393_v0 = vmul.f32 %v1353_v5, %v360_v61 }
  0x26   : > { %v394_v1 = vmul.f32 %v1353_v5, %v361_v62 }
  0x27   : > { %v408_v60 = vpack.c.bf16 %v388_v56, %v387_v55 }
  0x28   : > { %v411_v3 = vpack.c.bf16 %v394_v1, %v393_v0  ;;  %v1523_v0 = vld [vmem:[%s1674_s5] ss:$0 sm:$0xff] }
  0x2b   : > { %1132 = vmatmul.msk.bf16.gmra.mxu0 %vm433_vm0, %v398_v17 }
  0x3b   : > { %1133 = vmatmul.msk.bf16.gmra.mxu0 %vm433_vm0, %v399_v24 }
  0x4b   : > { %1134 = vmatmul.msk.bf16.gmra.mxu0 %vm433_vm0, %v400_v31 }
  0x5b   : > { %1135 = vmatmul.msk.bf16.gmra.mxu0 %vm433_vm0, %v401_v38  ;;  %v326_v38 = vld [vmem:[%s1347_s17 + $0xd8] sm:$0xff] }
  0x5c   : > { %v359_v41 = vsub.f32 %v326_v38, %v1349_v2 }
  0x5e   : > { %v392_v44 = vmul.f32 %v1353_v5, %v359_v41 }
  0x6b   : > { %1136 = vmatmul.msk.bf16.gmra.mxu0 %vm433_vm0, %v402_v45  ;;  %v410_v45 = vpack.c.bf16 %v392_v44, %v391_v43 }
  0x6d   : > { %1144 = vmatmul.msk.bf16.vlgmr.msra.gmra.mxu3 %vm433_vm0, %v410_v45 }
  0x7b   : > { %1137 = vmatmul.msk.bf16.gmra.mxu0 %vm433_vm0, %v403_v53 }
  0x7d   : > { %1145 = vmatmul.msk.bf16.gmra.mxu3 %vm433_vm0, %v411_v3 }
  0x8b   : > { %1138 = vmatmul.msk.bf16.gmra.mxu0 %vm433_vm0, %v404_v63 }
  0x98   : > { %v491_v9 = vpop.f32.mrf.mxu0 }
  0x99   : > { %v492_v13 = vadd.f32 %v1430_v10, %v491_v9  ;;  %v357_v9 = vsub.f32 %v324_v6, %v1349_v2 }
  0x9b   : > { %1139 = vmatmul.msk.bf16.gmra.mxu0 %vm433_vm0, %v405_v8  ;;  %v571_v18 = vmax.f32 %v492_v13, 0.0  ;;  %v356_v8 = vsub.f32 %v323_v4, %v1349_v2 }
  0x9d   : > { %v389_v15 = vmul.f32 %v1353_v5, %v356_v8 }
  0xa0   : > { %v493_v16 = vpop.f32.mrf.mxu0 }
  0xa1   : > { %v494_v17 = vadd.f32 %v1430_v10, %v493_v16  ;;  %v390_v16 = vmul.f32 %v1353_v5, %v357_v9 }
  0xa3   : > { %v572_v19 = vmax.f32 %v494_v17, 0.0  ;;  %v409_v20 = vpack.c.bf16 %v390_v16, %v389_v15 }
  0xa5   : > { %v603_v22 = vpack.c.bf16 %v572_v19, %v571_v18  ;;  %v329_v18 = vld [vmem:[%s1347_s17 + $0xf0] sm:$0xff]  ;;  %v330_v19 = vld [vmem:[%s1347_s17 + $0xf8] sm:$0xff] }
  0xa6   : > { %v362_v21 = vsub.f32 %v329_v18, %v1349_v2 }
  0xa7   : > { %1163 = vmatmul.msk.bf16.vlgmr.msra.gmra.mxu1 %vm655_vm1, %v603_v22  ;;  %v363_v22 = vsub.f32 %v330_v19, %v1349_v2 }
  0xa8   : > { %v496_v24 = vpop.f32.mrf.mxu0 }
  0xa9   : > { %v497_v27 = vadd.f32 %v1430_v10, %v496_v24  ;;  %v395_v24 = vmul.f32 %v1353_v5, %v362_v21  ;;  %v396_v25 = vmul.f32 %v1353_v5, %v363_v22 }
  0xab   : > { %1140 = vmatmul.msk.bf16.gmra.mxu0 %vm433_vm0, %v406_v23  ;;  %v573_v32 = vmax.f32 %v497_v27, 0.0  ;;  %v412_v26 = vpack.c.bf16 %v396_v25, %v395_v24 }
  0xad   : > { %1146 = vmatmul.msk.bf16.gmra.mxu3 %vm433_vm0, %v412_v26 }
  0xb0   : > { %v498_v30 = vpop.f32.mrf.mxu0 }
  0xb1   : > { %v499_v31 = vadd.f32 %v1430_v10, %v498_v30 }
  0xb3   : > { %v574_v33 = vmax.f32 %v499_v31, 0.0 }
  0xb5   : > { %v604_v36 = vpack.c.bf16 %v574_v33, %v573_v32 }
  0xb7   : > { %1164 = vmatmul.msk.bf16.gmra.mxu1 %vm655_vm1, %v604_v36 }
  0xb8   : > { %v501_v42 = vpop.f32.mrf.mxu0 }
  0xb9   : > { %v502_v48 = vadd.f32 %v1430_v10, %v501_v42  ;;  %v1222_v42 = vld [vmem:[%s1675_s6 + $0x18] sm:$0xff] }
  0xba   : > { %925 = vmatpush.bf16.msra.mxu2 %v1222_v42  ;;  %1229 = vmatpush.bf16.msra.mxu3 %v1222_v42 }
  0xbb   : > { %1141 = vmatmul.msk.bf16.gmra.mxu0 %vm433_vm0, %v407_v39  ;;  %v575_v53 = vmax.f32 %v502_v48, 0.0  ;;  %v1220_v48 = vld [vmem:[%s1675_s6 + $0x8] sm:$0xff] }
  0xbe   : > { %926 = vmatpush.bf16.msra.mxu2 %v1221_v46  ;;  %1230 = vmatpush.bf16.msra.mxu3 %v1221_v46 }
  0xc0   : > { %v503_v51 = vpop.f32.mrf.mxu0 }
  0xc1   : > { %v504_v52 = vadd.f32 %v1430_v10, %v503_v51 }
  0xc2   : > { %927 = vmatpush.bf16.msra.mxu2 %v1220_v48  ;;  %1231 = vmatpush.bf16.msra.mxu3 %v1220_v48 }
  0xc3   : > { %v576_v54 = vmax.f32 %v504_v52, 0.0 }
  0xc5   : > { %v605_v57 = vpack.c.bf16 %v576_v54, %v575_v53 }
  0xc6   : > { %928 = vmatpush.bf16.msra.mxu2 %v1219_v49  ;;  %1232 = vmatpush.bf16.msra.mxu3 %v1219_v49 }
  0xc7   : > { %1165 = vmatmul.msk.bf16.gmra.mxu1 %vm655_vm1, %v605_v57 }
  0xc8   : > { %v506_v63 = vpop.f32.mrf.mxu0 }
  0xc9   : > { %v507_v7 = vadd.f32 %v1430_v10, %v506_v63 }
  0xcb   : > { %1142 = vmatmul.msk.bf16.gmra.mxu0 %vm433_vm0, %v408_v60  ;;  %v577_v13 = vmax.f32 %v507_v7, 0.0 }
  0xd0   : > { %v508_v11 = vpop.f32.mrf.mxu0 }
  0xd1   : > { %v509_v12 = vadd.f32 %v1430_v10, %v508_v11 }
  0xd3   : > { %v578_v14 = vmax.f32 %v509_v12, 0.0 }
  0xd5   : > { %v606_v17 = vpack.c.bf16 %v578_v14, %v577_v13 }
  0xd7   : > { %1166 = vmatmul.msk.bf16.gmra.mxu1 %vm655_vm1, %v606_v17 }
  0xd8   : > { %v511_v23 = vpop.f32.mrf.mxu0 }
  0xd9   : > { %v512_v27 = vadd.f32 %v1430_v10, %v511_v23 }
  0xdb   : > { %1143 = vmatmul.msk.bf16.gmra.mxu0 %vm433_vm0, %v409_v20  ;;  %v579_v30 = vmax.f32 %v512_v27, 0.0 }
  0xe0   : > { %v513_v28 = vpop.f32.mrf.mxu0 }
  0xe1   : > { %v514_v29 = vadd.f32 %v1430_v10, %v513_v28 }
  0xe3   : > { %v580_v31 = vmax.f32 %v514_v29, 0.0 }
  0xe5   : > { %v607_v32 = vpack.c.bf16 %v580_v31, %v579_v30 }
  0xe7   : > { %1167 = vmatmul.msk.bf16.gmra.mxu1 %vm655_vm1, %v607_v32 }
  0xe8   : > { %v516_v2 = vpop.f32.mrf.mxu0 }
  0xe9   : > { %v517_v33 = vadd.f32 %v1430_v10, %v516_v2 }
  0xeb   : > { %v581_v35 = vmax.f32 %v517_v33, 0.0 }
  0xf0   : > { %v518_v34 = vpop.f32.mrf.mxu0 }
  0xf1   : > { %v519_v5 = vadd.f32 %v1430_v10, %v518_v34 }
  0xf3   : > { %v582_v36 = vmax.f32 %v519_v5, 0.0 }
  0xf5   : > { %v608_v37 = vpack.c.bf16 %v582_v36, %v581_v35 }
  0xf7   : > { %1168 = vmatmul.msk.bf16.gmra.mxu1 %vm655_vm1, %v608_v37 }
  0xf8   : > { %v521_v38 = vpop.f32.mrf.mxu0 }
  0xf9   : > { %v522_v39 = vadd.f32 %v1430_v10, %v521_v38 }
  0xfb   : > { %v583_v43 = vmax.f32 %v522_v39, 0.0 }
 0x100   : > { %v523_v40 = vpop.f32.mrf.mxu0 }
 0x101   : > { %v524_v41 = vadd.f32 %v1430_v10, %v523_v40 }
 0x103   : > { %v584_v44 = vmax.f32 %v524_v41, 0.0 }
 0x105   : > { %v609_v45 = vpack.c.bf16 %v584_v44, %v583_v43 }
 0x107   : > { %1169 = vmatmul.msk.bf16.gmra.mxu1 %vm655_vm1, %v609_v45  ;;  %v556_v45 = vpop.f32.mrf.mxu3 }
 0x108   : > { %v526_v47 = vpop.f32.mrf.mxu0 }
 0x109   : > { %v527_v50 = vadd.f32 %v1430_v10, %v526_v47 }
 0x10b   : > { %v585_v53 = vmax.f32 %v527_v50, 0.0 }
 0x110   : > { %v528_v51 = vpop.f32.mrf.mxu0 }
 0x111   : > { %v529_v52 = vadd.f32 %v1430_v10, %v528_v51 }
 0x113   : > { %v586_v54 = vmax.f32 %v529_v52, 0.0 }
 0x115   : > { %v610_v55 = vpack.c.bf16 %v586_v54, %v585_v53 }
 0x117   : > { %1170 = vmatmul.msk.bf16.gmra.mxu1 %vm655_vm1, %v610_v55  ;;  %v558_v55 = vpop.f32.mrf.mxu3 }
 0x118   : > { %v531_v56 = vpop.f32.mrf.mxu0 }
 0x119   : > { %v532_v57 = vadd.f32 %v1430_v10, %v531_v56 }
 0x11b   : > { %v587_v60 = vmax.f32 %v532_v57, 0.0 }
 0x120   : > { %v533_v58 = vpop.f32.mrf.mxu0 }
 0x121   : > { %v534_v59 = vadd.f32 %v1430_v10, %v533_v58 }
 0x123   : > { %v588_v61 = vmax.f32 %v534_v59, 0.0 }
 0x124   : > { %v713_v62 = vpop.f32.mrf.mxu1 }
 0x125   : > { %v611_v63 = vpack.c.bf16 %v588_v61, %v587_v60  ;;  %v714_v3 = vadd.f32 %v1523_v0, %v713_v62  ;;  %v561_v62 = vpop.f32.mrf.mxu3 }
 0x127   : > { %1171 = vmatmul.msk.bf16.gmra.mxu1 %vm655_vm1, %v611_v63  ;;  %v793_v7 = vmax.f32 %v714_v3, 0.0  ;;  %v557_v63 = vadd.f32 %v1430_v10, %v556_v45 }
 0x128   : > { %v536_v1 = vpop.f32.mrf.mxu0 }
 0x129   : > { %v537_v8 = vadd.f32 %v1430_v10, %v536_v1  ;;  %v559_v1 = vadd.f32 %v1430_v10, %v558_v55 }
 0x12b   : > { %v589_v14 = vmax.f32 %v537_v8, 0.0  ;;  %v598_v8 = vmax.f32 %v559_v1, 0.0 }
 0x12c   : > { %v715_v4 = vpop.f32.mrf.mxu1 }
 0x12d   : > { %v716_v6 = vadd.f32 %v1523_v0, %v715_v4 }
 0x12f   : > { %v794_v9 = vmax.f32 %v716_v6, 0.0 }
 0x130   : > { %v538_v11 = vpop.f32.mrf.mxu0 }
 0x131   : > { %v825_v12 = vpack.c.bf16 %v794_v9, %v793_v7  ;;  %v539_v13 = vadd.f32 %v1430_v10, %v538_v11  ;;  %v597_v7 = vmax.f32 %v557_v63, 0.0 }
 0x133   : > { %v590_v15 = vmax.f32 %v539_v13, 0.0  ;;  %1195 = vmatmul.msk.bf16.vlgmr.msra.gmra.mxu2 %vm655_vm1, %v825_v12  ;;  %v616_v12 = vpack.c.bf16 %v598_v8, %v597_v7  ;;  %v563_v13 = vpop.f32.mrf.mxu3 }
 0x134   : > { %v718_v16 = vpop.f32.mrf.mxu1 }
 0x135   : > { %v612_v17 = vpack.c.bf16 %v590_v15, %v589_v14  ;;  %v719_v19 = vadd.f32 %v1523_v0, %v718_v16  ;;  %v562_v16 = vadd.f32 %v1430_v10, %v561_v62 }
 0x137   : > { %1172 = vmatmul.msk.bf16.gmra.mxu1 %vm655_vm1, %v612_v17  ;;  %v795_v22 = vmax.f32 %v719_v19, 0.0  ;;  %v564_v17 = vadd.f32 %v1430_v10, %v563_v13 }
 0x138   : > { %v541_v18 = vpop.f32.mrf.mxu0 }
 0x139   : > { %v542_v23 = vadd.f32 %v1430_v10, %v541_v18 }
 0x13b   : > { %v591_v28 = vmax.f32 %v542_v23, 0.0  ;;  %v600_v23 = vmax.f32 %v564_v17, 0.0 }
 0x13c   : > { %v720_v20 = vpop.f32.mrf.mxu1 }
 0x13d   : > { %v721_v21 = vadd.f32 %v1523_v0, %v720_v20 }
 0x13f   : > { %v796_v24 = vmax.f32 %v721_v21, 0.0  ;;  %v566_v21 = vpop.f32.mrf.mxu3 }
 0x140   : > { %v543_v25 = vpop.f32.mrf.mxu0 }
 0x141   : > { %v826_v26 = vpack.c.bf16 %v796_v24, %v795_v22  ;;  %v544_v27 = vadd.f32 %v1430_v10, %v543_v25  ;;  %v599_v22 = vmax.f32 %v562_v16, 0.0 }
 0x143   : > { %v592_v29 = vmax.f32 %v544_v27, 0.0  ;;  %1196 = vmatmul.msk.bf16.gmra.mxu2 %vm655_vm1, %v826_v26  ;;  %v617_v26 = vpack.c.bf16 %v600_v23, %v599_v22 }
 0x144   : > { %v723_v30 = vpop.f32.mrf.mxu1 }
 0x145   : > { %v613_v31 = vpack.c.bf16 %v592_v29, %v591_v28  ;;  %v724_v2 = vadd.f32 %v1523_v0, %v723_v30  ;;  %v567_v30 = vadd.f32 %v1430_v10, %v566_v21 }
 0x147   : > { %1173 = vmatmul.msk.bf16.gmra.mxu1 %vm655_vm1, %v613_v31  ;;  %v797_v5 = vmax.f32 %v724_v2, 0.0  ;;  %v568_v27 = vpop.f32.mrf.mxu3 }
 0x148   : > { %v546_v32 = vpop.f32.mrf.mxu0  ;;  %v569_v31 = vadd.f32 %v1430_v10, %v568_v27 }
 0x149   : > { %v547_v35 = vadd.f32 %v1430_v10, %v546_v32 }
 0x14b   : > { %v593_v40 = vmax.f32 %v547_v35, 0.0 }
 0x14c   : > { %v725_v33 = vpop.f32.mrf.mxu1 }
 0x14d   : > { %v726_v34 = vadd.f32 %v1523_v0, %v725_v33 }
 0x14f   : > { %v798_v36 = vmax.f32 %v726_v34, 0.0  ;;  %v601_v34 = vmax.f32 %v567_v30, 0.0 }
 0x150   : > { %v548_v37 = vpop.f32.mrf.mxu0 }
 0x151   : > { %v827_v38 = vpack.c.bf16 %v798_v36, %v797_v5  ;;  %v549_v39 = vadd.f32 %v1430_v10, %v548_v37  ;;  %v602_v5 = vmax.f32 %v569_v31, 0.0 }
 0x153   : > { %v594_v41 = vmax.f32 %v549_v39, 0.0  ;;  %1197 = vmatmul.msk.bf16.gmra.mxu2 %vm655_vm1, %v827_v38  ;;  %v618_v37 = vpack.c.bf16 %v602_v5, %v601_v34 }
 0x154   : > { %v728_v42 = vpop.f32.mrf.mxu1 }
 0x155   : > { %v614_v43 = vpack.c.bf16 %v594_v41, %v593_v40  ;;  %v729_v46 = vadd.f32 %v1523_v0, %v728_v42 }
 0x157   : > { %1174 = vmatmul.msk.bf16.gmra.mxu1 %vm655_vm1, %v614_v43  ;;  %v799_v49 = vmax.f32 %v729_v46, 0.0 }
 0x158   : > { %v551_v44 = vpop.f32.mrf.mxu0 }
 0x159   : > { %v552_v50 = vadd.f32 %v1430_v10, %v551_v44 }
 0x15b   : > { %v595_v56 = vmax.f32 %v552_v50, 0.0 }
 0x15c   : > { %v730_v47 = vpop.f32.mrf.mxu1 }
 0x15d   : > { %v731_v48 = vadd.f32 %v1523_v0, %v730_v47 }
 0x15f   : > { %v800_v51 = vmax.f32 %v731_v48, 0.0 }
 0x160   : > { %v553_v52 = vpop.f32.mrf.mxu0 }
 0x161   : > { %v828_v53 = vpack.c.bf16 %v800_v51, %v799_v49  ;;  %v554_v54 = vadd.f32 %v1430_v10, %v553_v52 }
 0x163   : > { %v596_v57 = vmax.f32 %v554_v54, 0.0  ;;  %1198 = vmatmul.msk.bf16.gmra.mxu2 %vm655_vm1, %v828_v53 }
 0x164   : > { %v733_v58 = vpop.f32.mrf.mxu1 }
 0x165   : > { %v615_v59 = vpack.c.bf16 %v596_v57, %v595_v56  ;;  %v734_v60 = vadd.f32 %v1523_v0, %v733_v58 }
 0x167   : > { %1175 = vmatmul.msk.bf16.vlgmr.msrb.gmra.mxu3 %vm655_vm1, %v615_v59  ;;  %v801_v4 = vmax.f32 %v734_v60, 0.0 }
 0x16c   : > { %v735_v61 = vpop.f32.mrf.mxu1 }
 0x16d   : > { %v736_v3 = vadd.f32 %v1523_v0, %v735_v61 }
 0x16f   : > { %v802_v6 = vmax.f32 %v736_v3, 0.0 }
 0x171   : > { %v829_v9 = vpack.c.bf16 %v802_v6, %v801_v4 }
 0x173   : > { %1199 = vmatmul.msk.bf16.gmra.mxu2 %vm655_vm1, %v829_v9 }
 0x174   : > { %v738_v11 = vpop.f32.mrf.mxu1 }
 0x175   : > { %v739_v14 = vadd.f32 %v1523_v0, %v738_v11 }
 0x177   : > { %1176 = vmatmul.msk.bf16.gmra.mxu3 %vm655_vm1, %v616_v12  ;;  %v803_v19 = vmax.f32 %v739_v14, 0.0 }
 0x17c   : > { %v740_v15 = vpop.f32.mrf.mxu1 }
 0x17d   : > { %v741_v18 = vadd.f32 %v1523_v0, %v740_v15 }
 0x17f   : > { %v804_v20 = vmax.f32 %v741_v18, 0.0 }
 0x181   : > { %v830_v24 = vpack.c.bf16 %v804_v20, %v803_v19 }
 0x183   : > { %1200 = vmatmul.msk.bf16.gmra.mxu2 %vm655_vm1, %v830_v24 }
 0x184   : > { %v743_v25 = vpop.f32.mrf.mxu1 }
 0x185   : > { %v744_v28 = vadd.f32 %v1523_v0, %v743_v25 }
 0x187   : > { %1177 = vmatmul.msk.bf16.gmra.mxu3 %vm655_vm1, %v617_v26  ;;  %v805_v2 = vmax.f32 %v744_v28, 0.0 }
 0x18c   : > { %v745_v29 = vpop.f32.mrf.mxu1 }
 0x18d   : > { %v746_v32 = vadd.f32 %v1523_v0, %v745_v29 }
 0x18f   : > { %v806_v33 = vmax.f32 %v746_v32, 0.0 }
 0x191   : > { %v831_v35 = vpack.c.bf16 %v806_v33, %v805_v2 }
 0x193   : > { %1201 = vmatmul.msk.bf16.gmra.mxu2 %vm655_vm1, %v831_v35 }
 0x194   : > { %v748_v36 = vpop.f32.mrf.mxu1 }
 0x195   : > { %v749_v38 = vadd.f32 %v1523_v0, %v748_v36 }
 0x197   : > { %1178 = vmatmul.msk.bf16.gmra.mxu3 %vm655_vm1, %v618_v37  ;;  %v807_v10 = vmax.f32 %v749_v38, 0.0 }
 0x19c   : > { %v750_v39 = vpop.f32.mrf.mxu1 }
 0x19d   : > { %v751_v40 = vadd.f32 %v1523_v0, %v750_v39 }
 0x19f   : > { %v808_v41 = vmax.f32 %v751_v40, 0.0 }
 0x1a1   : > { %v832_v42 = vpack.c.bf16 %v808_v41, %v807_v10 }
 0x1a3   : > { %1202 = vmatmul.msk.bf16.gmra.mxu2 %vm655_vm1, %v832_v42 }
 0x1a4   : > { %v753_v43 = vpop.f32.mrf.mxu1 }
 0x1a5   : > { %v754_v44 = vadd.f32 %v1523_v0, %v753_v43 }
 0x1a7   : > { %v809_v47 = vmax.f32 %v754_v44, 0.0 }
 0x1ac   : > { %v755_v45 = vpop.f32.mrf.mxu1 }
 0x1ad   : > { %v756_v46 = vadd.f32 %v1523_v0, %v755_v45 }
 0x1af   : > { %v810_v48 = vmax.f32 %v756_v46, 0.0 }
 0x1b1   : > { %v833_v49 = vpack.c.bf16 %v810_v48, %v809_v47 }
 0x1b3   : > { %1203 = vmatmul.msk.bf16.gmra.mxu2 %vm655_vm1, %v833_v49 }
 0x1b4   : > { %v758_v50 = vpop.f32.mrf.mxu1 }
 0x1b5   : > { %v759_v52 = vadd.f32 %v1523_v0, %v758_v50 }
 0x1b6   : > { %v930_v51 = vpop.f32.mrf.mxu2 }
 0x1b7   : > { %1011 = vst.msk [vmem:[%s1579_s20] sm:$0xff] %vm1010_vm2, %v930_v51  ;;  %v811_v56 = vmax.f32 %v759_v52, 0.0 }
 0x1bc   : > { %v760_v53 = vpop.f32.mrf.mxu1 }
 0x1bd   : > { %v761_v54 = vadd.f32 %v1523_v0, %v760_v53 }
 0x1be   : > { %v932_v55 = vpop.f32.mrf.mxu2 }
 0x1bf   : > { %v812_v57 = vmax.f32 %v761_v54, 0.0  ;;  %1012 = vst.msk [vmem:[%s1579_s20 + $0x8] sm:$0xff] %vm1010_vm2, %v932_v55 }
 0x1c1   : > { %v834_v58 = vpack.c.bf16 %v812_v57, %v811_v56 }
 0x1c3   : > { %1204 = vmatmul.msk.bf16.gmra.mxu2 %vm655_vm1, %v834_v58 }
 0x1c4   : > { %v763_v59 = vpop.f32.mrf.mxu1 }
 0x1c5   : > { %v764_v61 = vadd.f32 %v1523_v0, %v763_v59 }
 0x1c6   : > { %v935_v60 = vpop.f32.mrf.mxu2 }
 0x1c7   : > { %1013 = vst.msk [vmem:[%s1579_s20 + $0x10] sm:$0xff] %vm1010_vm2, %v935_v60  ;;  %v813_v3 = vmax.f32 %v764_v61, 0.0 }
 0x1cc   : > { %v765_v62 = vpop.f32.mrf.mxu1 }
 0x1cd   : > { %v766_v63 = vadd.f32 %v1523_v0, %v765_v62 }
 0x1ce   : > { %v937_v1 = vpop.f32.mrf.mxu2 }
 0x1cf   : > { %v814_v4 = vmax.f32 %v766_v63, 0.0  ;;  %1014 = vst.msk [vmem:[%s1579_s20 + $0x18] sm:$0xff] %vm1010_vm2, %v937_v1 }
 0x1d1   : > { %v835_v6 = vpack.c.bf16 %v814_v4, %v813_v3 }
 0x1d3   : > { %1205 = vmatmul.msk.bf16.gmra.mxu2 %vm655_vm1, %v835_v6 }
 0x1d4   : > { %v768_v7 = vpop.f32.mrf.mxu1 }
 0x1d5   : > { %v769_v9 = vadd.f32 %v1523_v0, %v768_v7 }
 0x1d6   : > { %v940_v8 = vpop.f32.mrf.mxu2 }
 0x1d7   : > { %1015 = vst.msk [vmem:[%s1579_s20 + $0x20] sm:$0xff] %vm1010_vm2, %v940_v8  ;;  %v815_v14 = vmax.f32 %v769_v9, 0.0 }
 0x1dc   : > { %v770_v11 = vpop.f32.mrf.mxu1 }
 0x1dd   : > { %v771_v12 = vadd.f32 %v1523_v0, %v770_v11 }
 0x1de   : > { %v942_v13 = vpop.f32.mrf.mxu2 }
 0x1df   : > { %v816_v15 = vmax.f32 %v771_v12, 0.0  ;;  %1016 = vst.msk [vmem:[%s1579_s20 + $0x28] sm:$0xff] %vm1010_vm2, %v942_v13 }
 0x1e1   : > { %v836_v16 = vpack.c.bf16 %v816_v15, %v815_v14 }
 0x1e3   : > { %1206 = vmatmul.msk.bf16.gmra.mxu2 %vm655_vm1, %v836_v16 }
 0x1e6   : > { %v945_v17 = vpop.f32.mrf.mxu2 }
 0x1e7   : > { %1017 = vst.msk [vmem:[%s1579_s20 + $0x30] sm:$0xff] %vm1010_vm2, %v945_v17 }
 0x1ea   : > { %v773_v18 = vpop.f32.mrf.mxu3 }
 0x1eb   : > { %v774_v20 = vadd.f32 %v1523_v0, %v773_v18 }
 0x1ed   : > { %v817_v23 = vmax.f32 %v774_v20, 0.0 }
 0x1ee   : > { %v947_v19 = vpop.f32.mrf.mxu2 }
 0x1ef   : > { %1018 = vst.msk [vmem:[%s1579_s20 + $0x38] sm:$0xff] %vm1010_vm2, %v947_v19 }
 0x1f2   : > { %v775_v21 = vpop.f32.mrf.mxu3 }
 0x1f3   : > { %v776_v22 = vadd.f32 %v1523_v0, %v775_v21 }
 0x1f5   : > { %v818_v24 = vmax.f32 %v776_v22, 0.0 }
 0x1f6   : > { %v950_v25 = vpop.f32.mrf.mxu2 }
 0x1f7   : > { %v837_v26 = vpack.c.bf16 %v818_v24, %v817_v23  ;;  %1019 = vst.msk [vmem:[%s1579_s20 + $0x40] sm:$0xff] %vm1010_vm2, %v950_v25 }
 0x1f9   : > { %1207 = vmatmul.msk.bf16.vlgmr.msra.gmra.mxu3 %vm655_vm1, %v837_v26 }
 0x1fa   : > { %v778_v27 = vpop.f32.mrf.mxu3 }
 0x1fb   : > { %v779_v29 = vadd.f32 %v1523_v0, %v778_v27 }
 0x1fd   : > { %v819_v32 = vmax.f32 %v779_v29, 0.0 }
 0x1fe   : > { %v952_v28 = vpop.f32.mrf.mxu2 }
 0x1ff   : > { %1020 = vst.msk [vmem:[%s1579_s20 + $0x48] sm:$0xff] %vm1010_vm2, %v952_v28 }
 0x202   : > { %v780_v30 = vpop.f32.mrf.mxu3 }
 0x203   : > { %v781_v31 = vadd.f32 %v1523_v0, %v780_v30 }
 0x205   : > { %v820_v2 = vmax.f32 %v781_v31, 0.0 }
 0x206   : > { %v955_v33 = vpop.f32.mrf.mxu2 }
 0x207   : > { %v838_v34 = vpack.c.bf16 %v820_v2, %v819_v32  ;;  %1021 = vst.msk [vmem:[%s1579_s20 + $0x50] sm:$0xff] %vm1010_vm2, %v955_v33 }
 0x209   : > { %1208 = vmatmul.msk.bf16.gmra.mxu3 %vm655_vm1, %v838_v34 }
 0x20a   : > { %v783_v5 = vpop.f32.mrf.mxu3 }
 0x20b   : > { %v784_v36 = vadd.f32 %v1523_v0, %v783_v5 }
 0x20d   : > { %v821_v39 = vmax.f32 %v784_v36, 0.0 }
 0x20e   : > { %v957_v35 = vpop.f32.mrf.mxu2 }
 0x20f   : > { %1022 = vst.msk [vmem:[%s1579_s20 + $0x58] sm:$0xff] %vm1010_vm2, %v957_v35 }
 0x212   : > { %v785_v37 = vpop.f32.mrf.mxu3 }
 0x213   : > { %v786_v38 = vadd.f32 %v1523_v0, %v785_v37 }
 0x215   : > { %v822_v40 = vmax.f32 %v786_v38, 0.0 }
 0x216   : > { %v960_v10 = vpop.f32.mrf.mxu2 }
 0x217   : > { %v839_v41 = vpack.c.bf16 %v822_v40, %v821_v39  ;;  %1023 = vst.msk [vmem:[%s1579_s20 + $0x60] sm:$0xff] %vm1010_vm2, %v960_v10 }
 0x219   : > { %1209 = vmatmul.msk.bf16.gmra.mxu3 %vm655_vm1, %v839_v41 }
 0x21a   : > { %v788_v42 = vpop.f32.mrf.mxu3 }
 0x21b   : > { %v789_v44 = vadd.f32 %v1523_v0, %v788_v42 }
 0x21d   : > { %v823_v47 = vmax.f32 %v789_v44, 0.0 }
 0x21e   : > { %v962_v43 = vpop.f32.mrf.mxu2 }
 0x21f   : > { %1024 = vst.msk [vmem:[%s1579_s20 + $0x68] sm:$0xff] %vm1010_vm2, %v962_v43 }
 0x222   : > { %v790_v45 = vpop.f32.mrf.mxu3 }
 0x223   : > { %v791_v46 = vadd.f32 %v1523_v0, %v790_v45 }
 0x225   : > { %v824_v48 = vmax.f32 %v791_v46, 0.0 }
 0x226   : > { %v965_v49 = vpop.f32.mrf.mxu2 }
 0x227   : > { %v840_v50 = vpack.c.bf16 %v824_v48, %v823_v47  ;;  %1025 = vst.msk [vmem:[%s1579_s20 + $0x70] sm:$0xff] %vm1010_vm2, %v965_v49 }
 0x229   : > { %1210 = vmatmul.msk.bf16.gmra.mxu3 %vm655_vm1, %v840_v50 }
 0x22e   : > { %v967_v51 = vpop.f32.mrf.mxu2 }
 0x22f   : > { %1026 = vst.msk [vmem:[%s1579_s20 + $0x78] sm:$0xff] %vm1010_vm2, %v967_v51 }
 0x236   : > { %v970_v52 = vpop.f32.mrf.mxu2 }
 0x237   : > { %1027 = vst.msk [vmem:[%s1579_s20 + $0x80] sm:$0xff] %vm1010_vm2, %v970_v52 }
 0x23e   : > { %v972_v0 = vpop.f32.mrf.mxu2 }
 0x23f   : > { %1028 = vst.msk [vmem:[%s1579_s20 + $0x88] sm:$0xff] %vm1010_vm2, %v972_v0 }
 0x246   : > { %v975_v53 = vpop.f32.mrf.mxu2 }
 0x247   : > { %1029 = vst.msk [vmem:[%s1579_s20 + $0x90] sm:$0xff] %vm1010_vm2, %v975_v53 }
 0x24e   : > { %v977_v54 = vpop.f32.mrf.mxu2 }
 0x24f   : > { %1030 = vst.msk [vmem:[%s1579_s20 + $0x98] sm:$0xff] %vm1010_vm2, %v977_v54 }
 0x256   : > { %v980_v55 = vpop.f32.mrf.mxu2 }
 0x257   : > { %1031 = vst.msk [vmem:[%s1579_s20 + $0xa0] sm:$0xff] %vm1010_vm2, %v980_v55 }
 0x25e   : > { %v982_v56 = vpop.f32.mrf.mxu2 }
 0x25f   : > { %1032 = vst.msk [vmem:[%s1579_s20 + $0xa8] sm:$0xff] %vm1010_vm2, %v982_v56 }
 0x266   : > { %v985_v57 = vpop.f32.mrf.mxu2 }
 0x267   : > { %1033 = vst.msk [vmem:[%s1579_s20 + $0xb0] sm:$0xff] %vm1010_vm2, %v985_v57 }
 0x26e   : > { %v987_v58 = vpop.f32.mrf.mxu2 }
 0x26f   : > { %1034 = vst.msk [vmem:[%s1579_s20 + $0xb8] sm:$0xff] %vm1010_vm2, %v987_v58 }
 0x27c   : > { %v990_v59 = vpop.f32.mrf.mxu3 }
 0x27d   : > { %1035 = vst.msk [vmem:[%s1579_s20 + $0xc0] sm:$0xff] %vm1010_vm2, %v990_v59 }
 0x284   : > { %v992_v60 = vpop.f32.mrf.mxu3 }
 0x285   : > { %1036 = vst.msk [vmem:[%s1579_s20 + $0xc8] sm:$0xff] %vm1010_vm2, %v992_v60 }
 0x28c   : > { %v995_v61 = vpop.f32.mrf.mxu3 }
 0x28d   : > { %1037 = vst.msk [vmem:[%s1579_s20 + $0xd0] sm:$0xff] %vm1010_vm2, %v995_v61 }
 0x294   : > { %v997_v62 = vpop.f32.mrf.mxu3 }
 0x295   : > { %1038 = vst.msk [vmem:[%s1579_s20 + $0xd8] sm:$0xff] %vm1010_vm2, %v997_v62 }
 0x29c   : > { %v1000_v63 = vpop.f32.mrf.mxu3 }
 0x29d   : > { %1039 = vst.msk [vmem:[%s1579_s20 + $0xe0] sm:$0xff] %vm1010_vm2, %v1000_v63 }
 0x2a4   : > { %v1002_v1 = vpop.f32.mrf.mxu3 }
 0x2a5   : > { %1040 = vst.msk [vmem:[%s1579_s20 + $0xe8] sm:$0xff] %vm1010_vm2, %v1002_v1 }
 0x2ac   : > { %v1005_v3 = vpop.f32.mrf.mxu3 }
 0x2ad   : > { %1041 = vst.msk [vmem:[%s1579_s20 + $0xf0] sm:$0xff] %vm1010_vm2, %v1005_v3 }
 0x2b4   : > { %v1007_v4 = vpop.f32.mrf.mxu3 }
 0x2b5   : > { %1042 = vst.msk [vmem:[%s1579_s20 + $0xf8] sm:$0xff] %vm1010_vm2, %v1007_v4 }
 0x2b6 PF: > { %s18_s24 = sadd.s32 1, %s1279_s24  }
 0x2b7   : > { %p15_p7 = scmp.ge.s32.totalorder %s18_s24, 4  }
 0x2b9   :  { %17 = sbr.rel (!%p15_p7) target bundleno = 1 (0x1), region = 83 }
 0x2be   :  { %1065 = vsyncpa [#allocation3], 1 }
 0x2bf   :  { %1067 = vsyncpa [#allocation3 + $0x1], 1 }

</bundles_post_ra>
